<compile_context>
chip_gen: v7x
topology: tpu7x:2x2x1
jax: 0.10.0
libtpu: 0.0.40
codegen_flags: <defaults>
</compile_context>

<pallas_src>
import jax
import jax.numpy as jnp
from jax import lax
from jax.experimental import pallas as pl
from jax.experimental.pallas import tpu as pltpu


def _attention_kernel(xq_ref, xkv_ref, wqk_ref, kb_ref, wvt_ref, bv_ref,
                      gamma_ref, o_ref):
    # Blocks (lane axis = spatial HW, sublane axis = channels):
    #   xq_ref : (1, C, TQ)   query-row tile of x        (f32)
    #   xkv_ref: (1, C, HW)   full spatial extent (k/v)  (f32)
    #   wqk_ref: (C, C)  bf16, = Wq @ Wk^T               (host precomputed)
    #   kb_ref : (1, C)  bf16, = (Wk @ bq)^T             (host precomputed)
    #   wvt_ref: (C, C)  bf16, = Wv^T
    #   bv_ref : (C, 1)  f32
    #   gamma  : (1,)    f32 scalar in SMEM
    x_q = xq_ref[0]                                       # (C, TQ)
    x_kv = xkv_ref[0]                                     # (C, HW)
    hw = x_kv.shape[-1]

    xq_b = x_q.astype(jnp.bfloat16)
    xkv_b = x_kv.astype(jnp.bfloat16)

    # scores[i, j] = x_i^T (Wq Wk^T) x_j + (Wk bq) . x_j
    # (terms constant over j cancel under the softmax and are dropped)
    qproj = lax.dot_general(                              # (TQ, C) = x_q^T @ Wqk
        xq_b, wqk_ref[...],
        dimension_numbers=(((0,), (0,)), ((), ())),
        preferred_element_type=jnp.float32)
    scores = jnp.dot(qproj.astype(jnp.bfloat16), xkv_b,   # (TQ, HW)
                     preferred_element_type=jnp.float32)
    krow = jnp.dot(kb_ref[...], xkv_b,                    # (1, HW)
                   preferred_element_type=jnp.float32)
    scores = scores + krow

    # Softmax over j with deferred normalization.
    m = jnp.max(scores, axis=-1, keepdims=True)           # (TQ, 1)
    p = jnp.exp(scores - m)                               # (TQ, HW) f32
    p_b = p.astype(jnp.bfloat16)

    # v (bias folded out): v[:, j] = Wv^T x_j
    v = jnp.dot(wvt_ref[...], xkv_b,
                preferred_element_type=jnp.float32)       # (C, HW)
    v_b = v.astype(jnp.bfloat16)

    # out_un[c, i] = sum_j v[c, j] * p[i, j]   (contract last dims, no .T)
    out_un = lax.dot_general(
        v_b, p_b, dimension_numbers=(((1,), (1,)), ((), ())),
        preferred_element_type=jnp.float32)               # (C, TQ)
    # Row sums, produced directly in lane orientation via a 1-row matmul.
    rowsum = lax.dot_general(
        jnp.ones((1, hw), jnp.bfloat16), p_b,
        dimension_numbers=(((1,), (1,)), ((), ())),
        preferred_element_type=jnp.float32)               # (1, TQ)

    recip = pl.reciprocal(rowsum, approx=True)            # EUP slot
    out = out_un * recip + bv_ref[...]                    # (C, TQ)

    gamma = gamma_ref[0]
    o_ref[0] = (gamma * out + x_q).astype(o_ref.dtype)


def attention_forward(x_nchw, wq, bq, wk, bk, wv, bv, gamma):
    """x_nchw: (B, C, H, W) float32.  Conv1x1 weights in (Cin, Cout) matmul form."""
    B, C, H, W = x_nchw.shape
    HW = H * W

    # Lane-dense (B, C, HW) layout end-to-end (no transposes on either side).
    x = x_nchw.reshape(B, C, HW)

    # Host-side reassociation: scores contract over C instead of C//8.
    wqk = (wq @ wk.T).astype(jnp.bfloat16)                 # (C, C)
    kb = (wk @ bq).reshape(1, C).astype(jnp.bfloat16)      # (1, C)
    wvt = wv.T.astype(jnp.bfloat16)                        # (C, C)
    bv2 = bv.reshape(C, 1).astype(jnp.float32)             # (C, 1)
    gamma1 = gamma.reshape(1).astype(jnp.float32)          # (1,) -> SMEM scalar

    # Query tiling: TQ a multiple of 128 when it yields >= 2 tiles
    # (gives the second v7x TensorCore work); otherwise one full-HW tile.
    TQ = HW
    for cand in (512, 256, 128):
        if HW % cand == 0 and HW // cand >= 2:
            TQ = cand
            break
    NQ = HW // TQ

    # VMEM budget for the chosen tiles (inputs are double-buffered).
    est = (
        2 * 2 * C * TQ * 4          # x_q block + out block, double buffered f32
        + 2 * C * HW * 4            # x_kv block, double buffered f32
        + TQ * HW * (4 + 4 + 2)     # scores f32, p f32, p bf16
        + C * HW * (4 + 2 + 2)      # v f32, v bf16, x_kv bf16
        + 8 * C * C * 2             # small weight tiles
    )
    vmem_limit = int(min(max(2 * est, 32 * 1024 * 1024), 64 * 1024 * 1024))

    zero2 = lambda b, q: (0, 0)

    y = pl.pallas_call(
        _attention_kernel,
        out_shape=jax.ShapeDtypeStruct((B, C, HW), x.dtype),
        grid=(B, NQ),
        in_specs=[
            pl.BlockSpec((1, C, TQ), lambda b, q: (b, 0, q)),   # x (query tile)
            pl.BlockSpec((1, C, HW), lambda b, q: (b, 0, 0)),   # x (keys/values)
            pl.BlockSpec((C, C), zero2),                        # Wqk = Wq @ Wk^T
            pl.BlockSpec((1, C), zero2),                        # Wk @ bq
            pl.BlockSpec((C, C), zero2),                        # Wv^T
            pl.BlockSpec((C, 1), zero2),                        # bv
            pl.BlockSpec(memory_space=pltpu.MemorySpace.SMEM),  # gamma scalar
        ],
        out_specs=pl.BlockSpec((1, C, TQ), lambda b, q: (b, 0, q)),
        compiler_params=pltpu.CompilerParams(
            dimension_semantics=("parallel", "parallel"),
            vmem_limit_bytes=vmem_limit),
    )(x, x, wqk, kb, wvt, bv2, gamma1)

    return y.reshape(B, C, H, W)


def _reference(x_nchw, wq, bq, wk, bk, wv, bv, gamma):
    """Pure-JAX f32 reference (original, un-reassociated formulation)."""
    B, C, H, W = x_nchw.shape
    HW = H * W
    x = jnp.transpose(x_nchw.reshape(B, C, HW), (0, 2, 1))   # (B, HW, C)
    q = x @ wq + bq
    k = x @ wk + bk
    v = x @ wv + bv
    scores = jnp.einsum("bic,bjc->bij", q, k)
    attn = jax.nn.softmax(scores, axis=-1)
    out = jnp.einsum("bij,bjc->bic", attn, v)
    y = gamma.reshape(()) * out + x
    return jnp.transpose(y, (0, 2, 1)).reshape(B, C, H, W)


if __name__ == "__main__":
    # SAGAN-style attention block: batch=2, channels=16 (C//8 = 2), spatial 16x16
    # so HW = 256 and the query-tile grid axis (TQ=128) actually has extent 2.
    B, C, H, W = 2, 16, 16, 16
    Cq = C // 8

    key = jax.random.PRNGKey(0)
    kx, kq, kk, kv, kbq, kbk, kbv = jax.random.split(key, 7)

    x = jax.random.normal(kx, (B, C, H, W), dtype=jnp.float32)

    # 1x1 conv weights in (Cin, Cout) matmul form; biases as in nn.Conv2d.
    wq = 0.1 * jax.random.normal(kq, (C, Cq), dtype=jnp.float32)
    wk = 0.1 * jax.random.normal(kk, (C, Cq), dtype=jnp.float32)
    wv = 0.1 * jax.random.normal(kv, (C, C), dtype=jnp.float32)
    bq = 0.01 * jax.random.normal(kbq, (Cq,), dtype=jnp.float32)
    bk = 0.01 * jax.random.normal(kbk, (Cq,), dtype=jnp.float32)
    bv = 0.01 * jax.random.normal(kbv, (C,), dtype=jnp.float32)
    # SAGAN initializes gamma = 0; use a nonzero value so the attention path
    # actually contributes to the checked output.
    gamma = jnp.array([0.5], dtype=jnp.float32)

    y = attention_forward(x, wq, bq, wk, bk, wv, bv, gamma)
    y = jax.block_until_ready(y)

    y_ref = _reference(x, wq, bq, wk, bk, wv, bv, gamma)
    assert y.shape == (B, C, H, W)
    # bf16 MXU operands + approx reciprocal -> relax tolerance vs f32 reference.
    assert jnp.allclose(y, y_ref, atol=1e-2, rtol=1e-2), (
        float(jnp.max(jnp.abs(y - y_ref))))

    print("KERNEL_OK")
</pallas_src>

<mosaic_0001>
module attributes {stable_mosaic.version = 11 : i64} {
  func.func @_attention_kernel(%arg0: i32, %arg1: i32, %arg2: memref<1x16x128xf32, #tpu.memory_space<vmem>>, %arg3: memref<1x16x256xf32, #tpu.memory_space<vmem>>, %arg4: memref<16x16xbf16, #tpu.memory_space<vmem>>, %arg5: memref<1x16xbf16, #tpu.memory_space<vmem>>, %arg6: memref<16x16xbf16, #tpu.memory_space<vmem>>, %arg7: memref<16x1xf32, #tpu.memory_space<vmem>>, %arg8: memref<1xf32, #tpu.memory_space<smem>>, %arg9: memref<1x16x128xf32, #tpu.memory_space<vmem>>) attributes {dimension_semantics = [#tpu.dimension_semantics<parallel>, #tpu.dimension_semantics<parallel>], iteration_bounds = array<i64: 2, 2>, scalar_prefetch = 0 : i64, scratch_operands = 0 : i64, tpu.core_type = #tpu.core_type<tc>, window_params = [{transform_indices = @transform_0, window_bounds = array<i64: 1, 16, 128>}, {transform_indices = @transform_1, window_bounds = array<i64: 1, 16, 256>}, {pipeline_mode = #tpu.pipeline_mode<synchronous>, transform_indices = @transform_2, window_bounds = array<i64: 16, 16>}, {pipeline_mode = #tpu.pipeline_mode<synchronous>, transform_indices = @transform_3, window_bounds = array<i64: 1, 16>}, {pipeline_mode = #tpu.pipeline_mode<synchronous>, transform_indices = @transform_4, window_bounds = array<i64: 16, 16>}, {pipeline_mode = #tpu.pipeline_mode<synchronous>, transform_indices = @transform_5, window_bounds = array<i64: 16, 1>}, {transform_indices = @transform_6, window_bounds = array<i64: 1>}, {transform_indices = @transform_7, window_bounds = array<i64: 1, 16, 128>}]} {
    %c0 = arith.constant 0 : index
    %c0_0 = arith.constant 0 : index
    %c0_1 = arith.constant 0 : index
    %0 = vector.load %arg2[%c0, %c0_0, %c0_1] : memref<1x16x128xf32, #tpu.memory_space<vmem>>, vector<1x16x128xf32>
    %1 = vector.shape_cast %0 : vector<1x16x128xf32> to vector<16x128xf32>
    %c0_2 = arith.constant 0 : index
    %c0_3 = arith.constant 0 : index
    %c0_4 = arith.constant 0 : index
    %2 = vector.load %arg3[%c0_2, %c0_3, %c0_4] : memref<1x16x256xf32, #tpu.memory_space<vmem>>, vector<1x16x256xf32>
    %3 = vector.shape_cast %2 : vector<1x16x256xf32> to vector<16x256xf32>
    %4 = arith.truncf %1 : vector<16x128xf32> to vector<16x128xbf16>
    %5 = arith.truncf %3 : vector<16x256xf32> to vector<16x256xbf16>
    %c0_5 = arith.constant 0 : index
    %c0_6 = arith.constant 0 : index
    %6 = vector.load %arg4[%c0_5, %c0_6] : memref<16x16xbf16, #tpu.memory_space<vmem>>, vector<16x16xbf16>
    %cst = arith.constant dense<0.000000e+00> : vector<128x16xf32>
    %7 = tpu.matmul %4, %6, %cst {dimension_numbers = #tpu.dot_dimension_numbers<[0], [0], [1], [1], [0, 1, 1, 1], [], []>} : vector<16x128xbf16>, vector<16x16xbf16>, vector<128x16xf32> -> vector<128x16xf32>
    %8 = arith.truncf %7 : vector<128x16xf32> to vector<128x16xbf16>
    %cst_7 = arith.constant dense<0.000000e+00> : vector<128x256xf32>
    %9 = tpu.matmul %8, %5, %cst_7 {dimension_numbers = #tpu.dot_dimension_numbers<[1], [0], [0], [1], [0, 0, 1, 1], [], []>} : vector<128x16xbf16>, vector<16x256xbf16>, vector<128x256xf32> -> vector<128x256xf32>
    %c0_8 = arith.constant 0 : index
    %c0_9 = arith.constant 0 : index
    %10 = vector.load %arg5[%c0_8, %c0_9] : memref<1x16xbf16, #tpu.memory_space<vmem>>, vector<1x16xbf16>
    %cst_10 = arith.constant dense<0.000000e+00> : vector<1x256xf32>
    %11 = tpu.matmul %10, %5, %cst_10 {dimension_numbers = #tpu.dot_dimension_numbers<[1], [0], [0], [1], [0, 0, 1, 1], [], []>} : vector<1x16xbf16>, vector<16x256xbf16>, vector<1x256xf32> -> vector<1x256xf32>
    %12 = vector.broadcast %11 : vector<1x256xf32> to vector<128x256xf32>
    %13 = arith.addf %9, %12 : vector<128x256xf32>
    %cst_11 = arith.constant dense<0xFF800000> : vector<128xf32>
    %14 = vector.multi_reduction <maximumf>, %13, %cst_11 [1] : vector<128x256xf32> to vector<128xf32>
    %15 = vector.shape_cast %14 : vector<128xf32> to vector<128x1xf32>
    %16 = vector.broadcast %15 : vector<128x1xf32> to vector<128x256xf32>
    %17 = arith.subf %13, %16 : vector<128x256xf32>
    %18 = math.exp %17 : vector<128x256xf32>
    %19 = arith.truncf %18 : vector<128x256xf32> to vector<128x256xbf16>
    %c0_12 = arith.constant 0 : index
    %c0_13 = arith.constant 0 : index
    %20 = vector.load %arg6[%c0_12, %c0_13] : memref<16x16xbf16, #tpu.memory_space<vmem>>, vector<16x16xbf16>
    %cst_14 = arith.constant dense<0.000000e+00> : vector<16x256xf32>
    %21 = tpu.matmul %20, %5, %cst_14 {dimension_numbers = #tpu.dot_dimension_numbers<[1], [0], [0], [1], [0, 0, 1, 1], [], []>} : vector<16x16xbf16>, vector<16x256xbf16>, vector<16x256xf32> -> vector<16x256xf32>
    %22 = arith.truncf %21 : vector<16x256xf32> to vector<16x256xbf16>
    %cst_15 = arith.constant dense<0.000000e+00> : vector<16x128xf32>
    %23 = tpu.matmul %22, %19, %cst_15 {dimension_numbers = #tpu.dot_dimension_numbers<[1], [1], [0], [0], [0, 0, 1, 0], [], []>} : vector<16x256xbf16>, vector<128x256xbf16>, vector<16x128xf32> -> vector<16x128xf32>
    %cst_16 = arith.constant 1.000000e+00 : bf16
    %24 = vector.broadcast %cst_16 : bf16 to vector<1x256xbf16>
    %cst_17 = arith.constant dense<0.000000e+00> : vector<1x128xf32>
    %25 = tpu.matmul %24, %19, %cst_17 {dimension_numbers = #tpu.dot_dimension_numbers<[1], [1], [0], [0], [0, 0, 1, 0], [], []>} : vector<1x256xbf16>, vector<128x256xbf16>, vector<1x128xf32> -> vector<1x128xf32>
    %26 = tpu.reciprocal %25 {approx = true} : vector<1x128xf32> -> vector<1x128xf32>
    %27 = vector.broadcast %26 : vector<1x128xf32> to vector<16x128xf32>
    %28 = arith.mulf %23, %27 : vector<16x128xf32>
    %c0_18 = arith.constant 0 : index
    %c0_19 = arith.constant 0 : index
    %29 = vector.load %arg7[%c0_18, %c0_19] : memref<16x1xf32, #tpu.memory_space<vmem>>, vector<16x1xf32>
    %30 = vector.broadcast %29 : vector<16x1xf32> to vector<16x128xf32>
    %31 = arith.addf %28, %30 : vector<16x128xf32>
    %c0_20 = arith.constant 0 : index
    %32 = memref.load %arg8[%c0_20] : memref<1xf32, #tpu.memory_space<smem>>
    %33 = vector.broadcast %32 : f32 to vector<16x128xf32>
    %34 = arith.mulf %33, %31 : vector<16x128xf32>
    %35 = arith.addf %34, %1 : vector<16x128xf32>
    %c0_21 = arith.constant 0 : index
    %c0_22 = arith.constant 0 : index
    %c0_23 = arith.constant 0 : index
    %36 = vector.load %arg9[%c0_21, %c0_22, %c0_23] : memref<1x16x128xf32, #tpu.memory_space<vmem>>, vector<1x16x128xf32>
    %37 = vector.shape_cast %36 : vector<1x16x128xf32> to vector<16x128xf32>
    %38 = vector.shape_cast %35 : vector<16x128xf32> to vector<1x16x128xf32>
    tpu.vector_store %arg9[%c0_21, %c0_22, %c0_23], %38 {strides = array<i32>} : memref<1x16x128xf32, #tpu.memory_space<vmem>>, vector<1x16x128xf32>,
    return
  }
  func.func @transform_0(%arg0: i32, %arg1: i32) -> (i32, i32, i32) {
    %c0_i32 = arith.constant 0 : i32
    %c0_i32_0 = arith.constant 0 : i32
    return %arg0, %c0_i32, %arg1 : i32, i32, i32
  }
  func.func @transform_1(%arg0: i32, %arg1: i32) -> (i32, i32, i32) {
    %c0_i32 = arith.constant 0 : i32
    %c0_i32_0 = arith.constant 0 : i32
    %c0_i32_1 = arith.constant 0 : i32
    return %arg0, %c0_i32, %c0_i32_0 : i32, i32, i32
  }
  func.func @transform_2(%arg0: i32, %arg1: i32) -> (i32, i32) {
    %c0_i32 = arith.constant 0 : i32
    %c0_i32_0 = arith.constant 0 : i32
    %c0_i32_1 = arith.constant 0 : i32
    return %c0_i32, %c0_i32_0 : i32, i32
  }
  func.func @transform_3(%arg0: i32, %arg1: i32) -> (i32, i32) {
    %c0_i32 = arith.constant 0 : i32
    %c0_i32_0 = arith.constant 0 : i32
    %c0_i32_1 = arith.constant 0 : i32
    return %c0_i32, %c0_i32_0 : i32, i32
  }
  func.func @transform_4(%arg0: i32, %arg1: i32) -> (i32, i32) {
    %c0_i32 = arith.constant 0 : i32
    %c0_i32_0 = arith.constant 0 : i32
    %c0_i32_1 = arith.constant 0 : i32
    return %c0_i32, %c0_i32_0 : i32, i32
  }
  func.func @transform_5(%arg0: i32, %arg1: i32) -> (i32, i32) {
    %c0_i32 = arith.constant 0 : i32
    %c0_i32_0 = arith.constant 0 : i32
    %c0_i32_1 = arith.constant 0 : i32
    return %c0_i32, %c0_i32_0 : i32, i32
  }
  func.func @transform_6(%arg0: i32, %arg1: i32) -> i32 {
    %c0_i32 = arith.constant 0 : i32
    %c0_i32_0 = arith.constant 0 : i32
    return %c0_i32 : i32
  }
  func.func @transform_7(%arg0: i32, %arg1: i32) -> (i32, i32, i32) {
    %c0_i32 = arith.constant 0 : i32
    %c0_i32_0 = arith.constant 0 : i32
    return %arg0, %c0_i32, %arg1 : i32, i32, i32
  }
}

</mosaic_0001>

<bundles_post_ra>
// kernel: tpu_custom_call.1
= control target key start
LH: loop header
LB: loop body
LE: loop exit
PB: predicated region body
PF: predicated region fallthrough
CT: control target
= control target key end

     0   :  { %s2208_s0 = inlined_call_operand.hbm [shape: f32[2,16,256], index: 0, kind: input, shape index: {}]   ;;  %s2209_s1 = inlined_call_operand.hbm [shape: f32[2,16,256], index: 1, kind: input, shape index: {}]   ;;  %s2210_s2 = inlined_call_operand.vmem [shape: bf16[16,16], index: 2, kind: input, shape index: {}]   ;;  %s2211_s3 = inlined_call_operand.vmem [shape: bf16[1,16], index: 3, kind: input, shape index: {}]   ;;  %s2212_s4 = inlined_call_operand.vmem [shape: bf16[16,16], index: 4, kind: input, shape index: {}]   ;;  %s2213_s5 = inlined_call_operand.vmem [shape: f32[16,1], index: 5, kind: input, shape index: {}]   ;;  %s2214_s6 = inlined_call_operand.<no memory space> [shape: f32[1], index: 6, kind: input, shape index: {}]   ;;  %s2215_s7 = inlined_call_operand.hbm [shape: f32[2,16,256], index: 7, kind: output, shape index: {}]  }
   0x1   :  { %2229 = sst [smem:[#allocation18_spill]] %s2215_s7 }
   0x2   :  { %12 = sst [smem:[#allocation2]] %s2214_s6 }
   0x3   :  { %13 = vsyncpa [#allocation4], 0 }
   0x4   :  { %15 = vsyncpa [#allocation4 + $0x1], 0 }
   0x5   :  { %16 = vsyncpa [#allocation7], 0 }
   0x6   :  { %18 = vsyncpa [#allocation7 + $0x1], 0 }
   0x7   :  { %19 = vsyncpa [#allocation5], 0 }
   0x8   :  { %21 = vsyncpa [#allocation5 + $0x1], 0  ;;  %s1659_s26 = smov 0   ;;  %s1661_s27 = smov 0  }
   0x9   :  { %s1663_s28 = smov 0   ;;  %s1665_s29 = smov 0  }
   0xa   :  { %s1667_s30 = smov 0   ;;  %s1669_s8 = smov 0  }
   0xb   :  { %s1671_s9 = smov 0   ;;  %s1673_s6 = smov 0  }
   0xc   :  { %s1675_s10 = smov 0   ;;  %s1677_s11 = smov 0  }
   0xd   :  { %s1679_s12 = smov 0  }
   0xe LB: > { %2230 = sst [smem:[#allocation12_spill]] %s1586_s9  ;;  %s2216_s13 = sadd.s32 4294967295, %s1602_s12   ;;  %s1602_s12 = sphi %s1679_s12, %s27_s12   ;;  %s1598_s11 = sphi %s1677_s11, %s2271_s11   ;;  %s1594_s10 = sphi %s1675_s10, %s2270_s10   ;;  %s1590_s6 = sphi %s1673_s6, %s2269_s6   ;;  %s1586_s9 = sphi %s1671_s9, %s2268_s9   ;;  %s1582_s8 = sphi %s1669_s8, %s2267_s8   ;;  %s1578_s30 = sphi %s1667_s30, %s2266_s30   ;;  %s1574_s29 = sphi %s1665_s29, %s2265_s29   ;;  %s1570_s28 = sphi %s1663_s28, %s2264_s28   ;;  %s1566_s27 = sphi %s1661_s27, %s2263_s27   ;;  %s1562_s26 = sphi %s1659_s26, %s2262_s26  }
   0xf   : > { %2231 = sst [smem:[#allocation13_spill]] %s1590_s6  ;;  %s1162_s14 = sadd.s32 4294967294, %s1602_s12  }
  0x10   : > { %s36_s15 = sadd.s32 1, %s1594_s10  ;;  %s39_s16 = sadd.s32 1, %s1598_s11 }
  0x11   : > { %p37_p0 = scmp.ge.s32.totalorder %s36_s15, 2  ;;  %s48_s17 = sadd.s32 1, %s1582_s8 }
  0x12   : > { %p55_p1 = scmp.ne.s32.totalorder %s1582_s8, %s1578_s30  ;;  %p2224_p2 = scmp.eq.s32.totalorder %s1602_s12, 0 }
  0x13   : > { %s2273_s15 = smov (%p37_p0, %s36_s15), 0  ;;  %s2275_s16 = smov (!%p37_p0, %s39_s16), %s1598_s11 }
  0x14   : > { %2232 = sst [smem:[#allocation14_spill]] %s2273_s15  ;;  %s44_s18 = ssub.s32 %s1594_s10, %s2273_s15 }
  0x15   : > { %p1729_p3 = por %p2224_p2, %p55_p1  ;;  %p41_p4 = scmp.ge.s32.totalorder %s2275_s16, 2 }
  0x16   : > { %p2225_p5 = scmp.ne.s32.totalorder %s1578_s30, %s1574_s29  ;;  %p218_p6 = scmp.eq.s32.totalorder %s2216_s13, 3 }
  0x17   : > { %p224_p7 = scmp.eq.s32.totalorder %s1162_s14, 3  ;;  %s2277_s16 = smov (%p41_p4, %s2275_s16), 0 }
  0x18   : > { %2234 = sst [smem:[#allocation15_spill]] %s2277_s16  ;;  %p1739_p8 = por %p218_p6, %p55_p1 }
  0x19   : > { %p1746_p9 = por %p224_p7, %p2225_p5  ;;  %s1752_s22 = ssub.s32 %s1598_s11, %s2277_s16 }
  0x1a   : > { %s2235_s20 = scalar_select %p1739_p8, 1, 0 }
  0x1b   : > { %s2237_s21 = scalar_select %p1746_p9, 1, 0 }
  0x1c   : > { %2236 = sst [smem:[#allocation16_spill]] %s2235_s20  ;;  %s45_s23 = sor.u32 %s44_s18, %s1752_s22 }
  0x1d   : > { %2238 = sst [smem:[#allocation17_spill]] %s2237_s21  ;;  %p46_p11 = scmp.eq.s32.totalorder %s45_s23, 0 }
  0x1e   : > { %p2223_p12 = scmp.lt.s32.totalorder %s1602_s12, 4  ;;  %s259_s24 = sand.u32 1, %s1582_s8  }
  0x1f   : > { %s1166_s25 = sshll.u32 %s1598_s11, 2  ;;  %s1165_s13 = sshll.u32 %s259_s24, 4 }
  0x20   : > { %s1760_s14 = scalar_select %p46_p11, %s1582_s8, %s48_s17  }
  0x21   : > { %s268_s15 = sadd.s32 %s1594_s10, %s1166_s25  ;;  %s263_s20 = scalar_lea.vmem [#allocation3], %s1165_s13 }
  0x22   : > { %s1167_s7 = sshll.u32 %s268_s15, 7  ;;  %s271_s21 = sshll.u32 %s263_s20, 4  ;;  %s1768_s21 = int_to_ptr.vmem [resolvable:$true] %s271_s21 }
  0x23   : > { %s1766_s16 = scalar_lea.hbm %s2208_s0, %s1167_s7  ;;  %p1774_p13 = pnand %p2223_p12, %p1729_p3 }
  0x24   : > { %s1779_s13 = scalar_lea.sflag [#allocation4], %s259_s24  ;;  %s1416_s9 = scalar_lea.hbm %s1766_s16, 256 }
  0x25   : > { %p1417_p1 = scmp.ne.s32.totalorder %s1766_s16, %s1416_s9  ;;  %p1418_p4 = pneg %p1774_p13 }
  0x26   : > { %s1421_s15 = scalar_lea.hbm %s2208_s0, 1024  ;;  %p1422_p3 = scmp.lt.u32.totalorder %s1766_s16, %s2208_s0 }
  0x27   : > { %p1419_p6 = pnand %p1418_p4, %p1417_p1  ;;  %p1423_p11 = scmp.lt.u32.totalorder %s1421_s15, %s1416_s9 }
  0x28   : > { %p1425_p2 = scmp.lt.u32.totalorder %s1416_s9, %s1766_s16 }
  0x29   : > { %p1420_p7 = pneg %p1419_p6  ;;  %p1424_p12 = por %p1423_p11, %p1422_p3 }
  0x2b   : > { %p1426_p5 = por %p1425_p2, %p1424_p12 }
  0x2d   : > { %p1427_p10 = pnand %p1426_p5, %p1420_p7 }
  0x2f   : > { %1430 = shalt.err (!%p1427_p10)
}
  0x30   : > { %s1431_s20 = scalar_lea.vmem %s1768_s21, 256  ;;  %s1604_s23 = smov [#allocation3]  }
  0x31   : > { %p1432_p1 = scmp.ne.s32.totalorder %s1768_s21, %s1431_s20  ;;  %s1436_s24 = sshll.u32 %s1604_s23, 4  ;;  %s1437_s24 = int_to_ptr.vmem [resolvable:$false] %s1436_s24 }
  0x32   : > { %s1438_s25 = scalar_lea.vmem %s1437_s24, 512  ;;  %p1439_p9 = scmp.lt.s32.totalorder %s1768_s21, %s1437_s24 }
  0x33   : > { %p1434_p6 = pnand %p1432_p1, %p1418_p4  ;;  %p1440_p3 = scmp.lt.s32.totalorder %s1438_s25, %s1431_s20 }
  0x35   : > { %p1435_p0 = pneg %p1434_p6  ;;  %p1441_p11 = por %p1440_p3, %p1439_p9 }
  0x37   : > { %p1442_p2 = pnand %p1441_p11, %p1435_p0 }
  0x39   : > { %1445 = shalt.err (!%p1442_p2)
}
  0x3a   : > { %s1605_s9 = smov 256   ;;  %s1606_s7 = smov 128  }
  0x3b   : > { %s1607_s6 = smov 8   ;;  %p300_p5 = scmp.lt.s32.totalorder %s1602_s12, 5 }
  0x3c   : > { %1239 = dma.hbm_to_vmem [thread:$0]  (!%p1774_p13), %s1766_s16, 256, %s1768_s21, %s1779_s13, %s1605_s9, %s1606_s7, %s1607_s6  }
  0x3d   : > { %p2240_p9 = scmp.ge.s32.totalorder %s1602_s12, 1  ;;  %s2242_s18 = sadd.s32 4294967295, %s1602_s12  }
  0x3e   : > { %p62_p12 = scmp.eq.s32.totalorder %s2242_s18, 0  ;;  %s74_s19 = sadd.s32 1, %s1570_s28 }
  0x3f   : > { %p1811_p10 = pnand %p2240_p9, %p300_p5  ;;  %p2243_p0 = scmp.eq.s32.totalorder %s1752_s22, 0 }
  0x40   : > { %p2244_p4 = scmp.ne.s32.totalorder %s1578_s30, %s1574_s29  ;;  %p81_p1 = scmp.ne.s32.totalorder %s1570_s28, %s1566_s27 }
  0x41   : > { %s1821_s20 = scalar_select %p2243_p0, %s1570_s28, %s74_s19  }
  0x42   : > { %p1826_p7 = por %p62_p12, %p2244_p4  ;;  %p87_p13 = scmp.ne.s32.totalorder %s1566_s27, %s1562_s26 }
  0x43   : > { %s281_s16 = sand.u32 1, %s1570_s28   ;;  %p2246_p6 = scmp.eq.s32.totalorder %s1602_s12, 0 }
  0x44   : > { %s2245_s23 = scalar_select %p1826_p7, 1, 0 }
  0x45   : > { %p83_p3 = por %p81_p1, %p2246_p6  ;;  %p1837_p11 = por %p87_p13, %p62_p12 }
  0x46   : > { %s1168_s17 = sshll.u32 %s281_s16, 5  ;;  %s1200_s13 = sshll.u32 %s1598_s11, 9 }
  0x47   : > { %s2247_s21 = scalar_select %p1837_p11, 1, 0 }
  0x48   : > { %s1845_s25 = scalar_lea.hbm %s2209_s1, %s1200_s13  ;;  %s285_s7 = scalar_lea.vmem [#allocation6], %s1168_s17 }
  0x49   : > { %s292_s26 = sshll.u32 %s285_s7, 4  ;;  %p2248_p2 = scmp.lt.s32.totalorder %s1602_s12, 4  ;;  %s1847_s26 = int_to_ptr.vmem [resolvable:$true] %s292_s26 }
  0x4a   : > { %s1855_s18 = scalar_lea.sflag [#allocation7], %s281_s16  ;;  %s1446_s19 = scalar_lea.hbm %s1845_s25, 512 }
  0x4b   : > { %p1851_p5 = pnand %p2248_p2, %p83_p3  ;;  %p1447_p9 = scmp.ne.s32.totalorder %s1845_s25, %s1446_s19 }
  0x4c   : > { %s1451_s24 = scalar_lea.hbm %s2209_s1, 1024  ;;  %p1452_p1 = scmp.lt.u32.totalorder %s1845_s25, %s2209_s1 }
  0x4d   : > { %p1448_p12 = pneg %p1851_p5  ;;  %p1453_p13 = scmp.lt.u32.totalorder %s1451_s24, %s1446_s19 }
  0x4e   : > { %p1455_p3 = scmp.lt.u32.totalorder %s1446_s19, %s1845_s25 }
  0x4f   : > { %p1449_p0 = pnand %p1448_p12, %p1447_p9  ;;  %p1454_p6 = por %p1453_p13, %p1452_p1 }
  0x51   : > { %p1450_p4 = pneg %p1449_p0  ;;  %p1456_p2 = por %p1455_p3, %p1454_p6 }
  0x53   : > { %p1457_p8 = pnand %p1456_p2, %p1450_p4 }
  0x55   : > { %1460 = shalt.err (!%p1457_p8)
}
  0x56   : > { %s1461_s16 = scalar_lea.vmem %s1847_s26, 512  ;;  %s1608_s17 = smov [#allocation6]  }
  0x57   : > { %p1462_p9 = scmp.ne.s32.totalorder %s1847_s26, %s1461_s16  ;;  %s1466_s13 = sshll.u32 %s1608_s17, 4  ;;  %s1467_s13 = int_to_ptr.vmem [resolvable:$false] %s1466_s13 }
  0x58   : > { %s1468_s22 = scalar_lea.vmem %s1467_s13, 1024  ;;  %p1469_p7 = scmp.lt.s32.totalorder %s1847_s26, %s1467_s13 }
  0x59   : > { %p1464_p0 = pnand %p1462_p9, %p1448_p12  ;;  %p1470_p1 = scmp.lt.s32.totalorder %s1468_s22, %s1461_s16 }
  0x5b   : > { %p1465_p11 = pneg %p1464_p0  ;;  %p1471_p13 = por %p1470_p1, %p1469_p7 }
  0x5d   : > { %p1472_p6 = pnand %p1471_p13, %p1465_p11 }
  0x5f   : > { %1475 = shalt.err (!%p1472_p6)
}
  0x60   : > { %s1609_s19 = smov 16   ;;  %304 = sbr.rel (%p1811_p10) target bundleno = 1129 (0x469), region = 48 }
  0x61   : > { %1242 = dma.hbm_to_vmem [thread:$0]  (!%p1851_p5), %s1845_s25, 512, %s1847_s26, %s1855_s18, %s1605_s9, %s1605_s9, %s1609_s19  }
  0x62   : > { %s1888_s24 = sand.u32 (!%p1811_p10), 1, %s1578_s30   ;;  %p2250_p8 = scmp.ne.s32.totalorder (!%p1811_p10), %s2245_s23, 0 }
  0x63   : > { %s1172_s7 = sshll.u32 (!%p1811_p10), %s1888_s24, 4  ;;  %s307_s16 = scalar_lea.sflag (!%p1811_p10), [#allocation4], %s1888_s24 }
  0x64   : > { %s310_s6 = scalar_lea.vmem (!%p1811_p10), [#allocation3], %s1172_s7 }
  0x67   : > { %1549 = dma.done.wait (%p2250_p8), %s307_s16, 256  }
  0x68   : > { %1551 = vsyncadd (%p2250_p8), %s307_s16, 4294967040  ;;  %s315_s9 = sand.u32 1, %s1566_s27   ;;  %p2251_p10 = scmp.ne.s32.totalorder %s2247_s21, 0 }
  0x69   : > { %s1173_s15 = sshll.u32 %s315_s9, 5  ;;  %s316_s25 = scalar_lea.sflag [#allocation7], %s315_s9 }
  0x6a   : > { %s319_s26 = scalar_lea.vmem [#allocation6], %s1173_s15 }
  0x6b   : > { %1553 = dma.done.wait (%p2251_p10), %s316_s25, 512  }
  0x6c   : > { %1555 = vsyncadd (%p2251_p10), %s316_s25, 4294966784  ;;  %v1903_v0 = vld [vmem:[%s310_s6] sm:$0xff]  ;;  %v1905_v1 = vld [vmem:[%s310_s6 + $0x8] sm:$0xff]  ;;  %v1610_v7 = vmov 0   ;;  %vm390_vm0 = vcmask 130048   ;;  %v565_v49 = vlaneseq  ;;  %s2252_s15 = sld [smem:[#allocation13_spill]] }
  0x6d   : > { %v363_v2 = vpack.c.bf16 %v1905_v1, %v1903_v0  ;;  %v1348_v3 = vld [vmem:[%s2210_s2] sm:$0xff]   ;;  %v360_v4 = vld [vmem:[%s319_s26 + $0x8] sm:$0xff]  ;;  %v362_v5 = vld [vmem:[%s319_s26 + $0x18] sm:$0xff]  ;;  %1346 = vset.pattern.permute.xlu1 %v1610_v7  ;;  %s2253_s25 = sld [smem:[#allocation12_spill]]  ;;  %s354_s21 = scalar_lea.vmem [#allocation8], %s1172_s7 }
  0x6e   : > { %1210 = vmatprep.subr.bf16.mxu0 %v1348_v3  ;;  %1228 = vmatprep.subr.bf16.mxu1 %v1348_v3  ;;  %v365_v6 = vpack.c.bf16 %v362_v5, %v360_v4  ;;  %v359_v9 = vld [vmem:[%s319_s26] sm:$0xff]  ;;  %v361_v10 = vld [vmem:[%s319_s26 + $0x10] sm:$0xff]  ;;  %v566_v50 = vshrl.u32 %v565_v49, 7  ;;  %s1027_s26 = sld [smem:[#allocation2]]  ;;  %s2254_s17 = sld [smem:[#allocation16_spill]] }
  0x6f   : > { %368 = vxpose.xlu0.c.b16.start.end [1/1] (short) %v363_v2, 128  ;;  %1211 = vmatpush3.bf16.msra.mxu0 %v1348_v3  ;;  %v364_v12 = vpack.c.bf16 %v361_v10, %v359_v9  ;;  %v520_v19 = vld [vmem:[%s2211_s3] sm:$0x1]  ;;  %s1050_s13 = sshll.u32 %s354_s21, 4  ;;  %s2255_s6 = sld [smem:[#allocation18_spill]]  ;;  %s2138_s13 = int_to_ptr.vmem [resolvable:$true] %s1050_s13 }
  0x70   : > { %1229 = vmatpush3.bf16.msra.mxu1 %v1348_v3  ;;  %880 = vmatprep.subr.bf16.mxu0 %v365_v6  ;;  %v1349_v48 = vld [vmem:[%s2212_s4] sm:$0xff]   ;;  %v1948_v51 = vsub.s32 0, %v566_v50  ;;  %s1036_s7 = scalar_lea.sflag [#allocation5], %s1888_s24 }
  0x71   : > { %524 = vmatprep.subr.bf16.mxu1 %v365_v6 }
  0x72   : > { %s1196_s23 = sshll.u32 %s2252_s15, 2 }
  0x73   : > { %s1047_s18 = sadd.s32 %s2253_s25, %s1196_s23  ;;  %s1476_s25 = scalar_lea.vmem %s2138_s13, 256 }
  0x74   : > { %s1197_s22 = sshll.u32 %s1047_s18, 7  ;;  %p1477_p7 = scmp.ne.s32.totalorder %s2138_s13, %s1476_s25 }
  0x75   : > { %s2256_s15 = smov %s2255_s6  ;;  %s2143_s9 = scalar_lea.hbm %s2255_s6, %s1197_s22 }
  0x76   : > { %p2257_p11 = scmp.ne.s32.totalorder %s2254_s17, 0 }
  0x78   : > { %1347 = vset.pattern.permute.xlu0 %v1610_v7  ;;  %p1478_p5 = pnand %p1477_p7, %p2257_p11 }
  0x7a   : > { %p1479_p12 = pneg %p1478_p5 }
  0xd5   : > { %v376_v8 = vpop.trf.xlu0 }
  0xd6   : > { %1212 = vmatprep.mubr.msk.bf16.mxu0 %vm390_vm0, %v376_v8 }
  0xd9   : > { %v377_v11 = vpop.trf.xlu0 }
  0xda   : > { %1213 = vmatmul.mubr.msk.bf16.vlgmr.msra.gmra.mrb[0].mxu0 %vm390_vm0, %v377_v11 }
  0xdb   : > { %881 = vmatpush1.bf16.msra.mxu0 %v364_v12 }
  0xdd   : > { %v378_v13 = vpop.trf.xlu0 }
  0xde   : > { %1216 = vmatprep.mubr.msk.bf16.mxu0 %vm390_vm0, %v378_v13 }
  0xe1   : > { %v379_v14 = vpop.trf.xlu0 }
  0xe2   : > { %1217 = vmatmul.mubr.msk.bf16.gmra.mrb[4].mxu0 %vm390_vm0, %v379_v14 }
  0xe5   : > { %v380_v15 = vpop.trf.xlu0 }
  0xe6   : > { %1220 = vmatprep.mubr.msk.bf16.mxu0 %vm390_vm0, %v380_v15 }
  0xe9   : > { %v381_v16 = vpop.trf.xlu0 }
  0xea   : > { %1221 = vmatmul.mubr.msk.bf16.gmra.mrb[8].mxu0 %vm390_vm0, %v381_v16 }
  0xeb   : > { %912 = vmatprep.mubr.bf16.mxu0 %v1610_v7 }
  0xed   : > { %v382_v17 = vpop.trf.xlu0 }
  0xee   : > { %1224 = vmatprep.mubr.msk.bf16.mxu1 %vm390_vm0, %v382_v17 }
  0xf1   : > { %v383_v18 = vpop.trf.xlu0 }
  0xf2   : > { %1225 = vmatmul.mubr.msk.bf16.vlgmr.msra.gmra.mrb[0].mxu1 %vm390_vm0, %v383_v18  ;;  %1194 = vmatmul.mubr.msk.bf16.vlgmr.msra.gmra.mrb[12].mxu0 %vm390_vm0, %v1349_v48 }
  0xf3   : > { %525 = vmatpush1.bf16.msra.mxu1 %v364_v12  ;;  %556 = vmatprep.mubr.bf16.mxu1 %v1610_v7 }
  0xf4   : > { %597 = vmatprep.subr.bf16.mxu1 %v365_v6 }
  0xfa   : > { %1184 = vmatmul.mubr.msk.bf16.vlgmr.msra.gmra.mrb[4].mxu1 %vm390_vm0, %v520_v19 }
  0xfb   : > { %598 = vmatpush1.bf16.msra.mxu1 %v364_v12  ;;  %629 = vmatprep.mubr.bf16.mxu1 %v1610_v7 }
 0x1ad   : > { %v1214_v20 = vpop.f32.mrb[0].mxu0 }
 0x1ae   : > { %v449_v21 = vpop.f32.mrb[1].mxu0 }
 0x1af   : > { %v1215_v22 = vpop.f32.mrb[2].mxu0 }
 0x1b0   : > { %v513_v23 = vpack.c.bf16 %v1215_v22, %v1214_v20  ;;  %v452_v24 = vpop.f32.mrb[3].mxu0 }
 0x1b1   : > { %v512_v25 = vpack.c.bf16 %v452_v24, %v449_v21 }
 0x1b3   : > { %1185 = vmatmul.mubr.msk.bf16.vlgmr.msra.gmra.mrb[8].mxu1 %vm390_vm0, %v512_v25 }
 0x1b4   : > { %639 = vmatprep.mubr.bf16.mxu1 %v1610_v7 }
 0x1b5   : > { %v1218_v26 = vpop.f32.mrb[4].mxu0 }
 0x1b6   : > { %v465_v27 = vpop.f32.mrb[5].mxu0 }
 0x1b7   : > { %v1219_v28 = vpop.f32.mrb[6].mxu0 }
 0x1b8   : > { %v515_v29 = vpack.c.bf16 %v1219_v28, %v1218_v26  ;;  %v468_v30 = vpop.f32.mrb[7].mxu0 }
 0x1b9   : > { %v514_v31 = vpack.c.bf16 %v468_v30, %v465_v27 }
 0x1bb   : > { %1186 = vmatmul.mubr.msk.bf16.gmra.mrb[12].mxu1 %vm390_vm0, %v513_v23 }
 0x1bc   : > { %649 = vmatprep.mubr.bf16.mxu1 %v1610_v7 }
 0x1bd   : > { %v1222_v32 = vpop.f32.mrb[8].mxu0 }
 0x1be   : > { %v481_v33 = vpop.f32.mrb[9].mxu0 }
 0x1bf   : > { %v1223_v34 = vpop.f32.mrb[10].mxu0 }
 0x1c0   : > { %v517_v35 = vpack.c.bf16 %v1223_v34, %v1222_v32  ;;  %v484_v36 = vpop.f32.mrb[11].mxu0 }
 0x1c1   : > { %v516_v37 = vpack.c.bf16 %v484_v36, %v481_v33 }
 0x1c3   : > { %1187 = vmatmul.mubr.msk.bf16.gmra.mrb[16].mxu1 %vm390_vm0, %v514_v31 }
 0x1c4   : > { %659 = vmatprep.mubr.bf16.mxu1 %v1610_v7 }
 0x1c5   : > { %v1226_v38 = vpop.f32.mrb[0].mxu1 }
 0x1c6   : > { %v497_v39 = vpop.f32.mrb[1].mxu1 }
 0x1c7   : > { %v1227_v40 = vpop.f32.mrb[2].mxu1 }
 0x1c8   : > { %v519_v41 = vpack.c.bf16 %v1227_v40, %v1226_v38  ;;  %v500_v42 = vpop.f32.mrb[3].mxu1 }
 0x1c9   : > { %v518_v43 = vpack.c.bf16 %v500_v42, %v497_v39 }
 0x1cb   : > { %1188 = vmatmul.mubr.msk.bf16.gmra.mrb[20].mxu1 %vm390_vm0, %v515_v29 }
 0x1cc   : > { %669 = vmatprep.mubr.bf16.mxu1 %v1610_v7 }
 0x1cd   : > { %v558_v44 = vpop.f32.mrb[4].mxu1 }
 0x1ce   : > { %v560_v45 = vpop.f32.mrb[5].mxu1  ;;  %v1951_v52 = vrot.slane %v558_v44, %v1948_v51 }
 0x1cf   : > { %v562_v46 = vpop.f32.mrb[6].mxu1  ;;  %v1954_v53 = vrot.slane %v560_v45, %v1948_v51 }
 0x1d0   : > { %v563_v47 = vpop.f32.mrb[7].mxu1 }
 0x1d3   : > { %1189 = vmatmul.mubr.msk.bf16.gmra.mrb[24].mxu1 %vm390_vm0, %v516_v37 }
 0x1d4   : > { %679 = vmatprep.mubr.bf16.mxu1 %v1610_v7 }
 0x1db   : > { %1190 = vmatmul.mubr.msk.bf16.gmra.mrb[28].mxu1 %vm390_vm0, %v517_v35 }
 0x1dc   : > { %689 = vmatprep.mubr.bf16.mxu1 %v1610_v7 }
 0x1e3   : > { %1191 = vmatmul.mubr.msk.bf16.gmra.mrb[32].mxu1 %vm390_vm0, %v518_v43 }
 0x1e4   : > { %699 = vmatprep.mubr.bf16.mxu1 %v1610_v7 }
 0x1eb   : > { %1192 = vmatmul.mubr.msk.bf16.gmra.mrb[36].mxu1 %vm390_vm0, %v519_v41 }
 0x286   : > { %v631_v54 = vpop.f32.mrb[8].mxu1 }
 0x287   : > { %v1957_v55 = vadd.f32 %v631_v54, %v1951_v52  ;;  %v633_v56 = vpop.f32.mrb[9].mxu1 }
 0x288   : > { %v1960_v57 = vadd.f32 %v633_v56, %v1954_v53  ;;  %v635_v58 = vpop.f32.mrb[10].mxu1 }
 0x289   : > { %v1963_v59 = vadd.f32 %v635_v58, %v1951_v52  ;;  %v637_v60 = vpop.f32.mrb[11].mxu1 }
 0x28a   : > { %v1966_v61 = vadd.f32 %v637_v60, %v1954_v53  ;;  %v710_v62 = vmax.f32 %v1957_v55, %v1960_v57 }
 0x28c   : > { %711 = vmax.xlane.f32.xlu0 %v710_v62  ;;  %v713_v63 = vmax.f32 %v1963_v59, %v1966_v61 }
 0x28e   : > { %v641_v2 = vpop.f32.mrb[12].mxu1  ;;  %714 = vmax.xlane.f32.xlu1 %v713_v63 }
 0x28f   : > { %v1973_v3 = vadd.f32 %v641_v2, %v1951_v52  ;;  %v643_v4 = vpop.f32.mrb[13].mxu1 }
 0x290   : > { %v1976_v5 = vadd.f32 %v643_v4, %v1954_v53  ;;  %v645_v6 = vpop.f32.mrb[14].mxu1 }
 0x291   : > { %v1979_v7 = vadd.f32 %v645_v6, %v1951_v52  ;;  %v647_v8 = vpop.f32.mrb[15].mxu1 }
 0x292   : > { %v1982_v9 = vadd.f32 %v647_v8, %v1954_v53  ;;  %v716_v10 = vmax.f32 %v1973_v3, %v1976_v5 }
 0x294   : > { %717 = vmax.xlane.f32.xlu1 %v716_v10  ;;  %v719_v12 = vmax.f32 %v1979_v7, %v1982_v9 }
 0x296   : > { %v651_v11 = vpop.f32.mrb[16].mxu1 }
 0x297   : > { %v1989_v13 = vadd.f32 %v651_v11, %v1951_v52  ;;  %v653_v14 = vpop.f32.mrb[17].mxu1 }
 0x298   : > { %v1992_v15 = vadd.f32 %v653_v14, %v1954_v53  ;;  %v655_v16 = vpop.f32.mrb[18].mxu1  ;;  %720 = vmax.xlane.f32.xlu1 %v719_v12 }
 0x299   : > { %v1995_v17 = vadd.f32 %v655_v16, %v1951_v52  ;;  %v657_v18 = vpop.f32.mrb[19].mxu1 }
 0x29a   : > { %v1998_v19 = vadd.f32 %v657_v18, %v1954_v53  ;;  %v722_v20 = vmax.f32 %v1989_v13, %v1992_v15 }
 0x29c   : > { %723 = vmax.xlane.f32.xlu1 %v722_v20  ;;  %v725_v22 = vmax.f32 %v1995_v17, %v1998_v19 }
 0x29e   : > { %v661_v21 = vpop.f32.mrb[20].mxu1 }
 0x29f   : > { %v2005_v23 = vadd.f32 %v661_v21, %v1951_v52  ;;  %v663_v24 = vpop.f32.mrb[21].mxu1 }
 0x2a0   : > { %v2008_v25 = vadd.f32 %v663_v24, %v1954_v53  ;;  %v665_v26 = vpop.f32.mrb[22].mxu1  ;;  %726 = vmax.xlane.f32.xlu1 %v725_v22 }
 0x2a1   : > { %v2011_v27 = vadd.f32 %v665_v26, %v1951_v52  ;;  %v667_v28 = vpop.f32.mrb[23].mxu1 }
 0x2a2   : > { %v2014_v29 = vadd.f32 %v667_v28, %v1954_v53  ;;  %v728_v30 = vmax.f32 %v2005_v23, %v2008_v25  ;;  %v1611_v28 = vmov 1065369472  }
 0x2a3   : > { %998 = vmatprep.mubr.bf16.mxu0 %v1611_v28 }
 0x2a4   : > { %729 = vmax.xlane.f32.xlu1 %v728_v30  ;;  %v731_v32 = vmax.f32 %v2011_v27, %v2014_v29  ;;  %v2085_v30 = vpop.f32.mrb[12].mxu0 }
 0x2a6   : > { %v671_v31 = vpop.f32.mrb[24].mxu1 }
 0x2a7   : > { %v2021_v33 = vadd.f32 %v671_v31, %v1951_v52  ;;  %v673_v34 = vpop.f32.mrb[25].mxu1  ;;  %v916_v31 = vpop.f32.mrb[13].mxu0 }
 0x2a8   : > { %v2024_v35 = vadd.f32 %v673_v34, %v1954_v53  ;;  %v675_v36 = vpop.f32.mrb[26].mxu1  ;;  %732 = vmax.xlane.f32.xlu1 %v731_v32 }
 0x2a9   : > { %v2027_v37 = vadd.f32 %v675_v36, %v1951_v52  ;;  %v677_v38 = vpop.f32.mrb[27].mxu1  ;;  %v1014_v36 = vld [vmem:[%s2213_s5 + $0x8] sm:$0xff] }
 0x2aa   : > { %v2030_v39 = vadd.f32 %v677_v38, %v1954_v53  ;;  %v734_v40 = vmax.f32 %v2021_v33, %v2024_v35  ;;  %v1013_v38 = vld [vmem:[%s2213_s5] sm:$0xff] }
 0x2ac   : > { %735 = vmax.xlane.f32.xlu1 %v734_v40  ;;  %v737_v42 = vmax.f32 %v2027_v37, %v2030_v39 }
 0x2ae   : > { %v681_v41 = vpop.f32.mrb[28].mxu1 }
 0x2af   : > { %v2037_v43 = vadd.f32 %v681_v41, %v1951_v52  ;;  %v683_v44 = vpop.f32.mrb[29].mxu1 }
 0x2b0   : > { %v2040_v45 = vadd.f32 %v683_v44, %v1954_v53  ;;  %v685_v46 = vpop.f32.mrb[30].mxu1  ;;  %738 = vmax.xlane.f32.xlu1 %v737_v42 }
 0x2b1   : > { %v2043_v47 = vadd.f32 %v685_v46, %v1951_v52  ;;  %v687_v48 = vpop.f32.mrb[31].mxu1 }
 0x2b2   : > { %v2046_v49 = vadd.f32 %v687_v48, %v1954_v53  ;;  %v740_v50 = vmax.f32 %v2037_v43, %v2040_v45 }
 0x2b4   : > { %741 = vmax.xlane.f32.xlu1 %v740_v50  ;;  %v743_v56 = vmax.f32 %v2043_v47, %v2046_v49 }
 0x2b6   : > { %v691_v54 = vpop.f32.mrb[32].mxu1 }
 0x2b7   : > { %v2053_v58 = vadd.f32 %v691_v54, %v1951_v52  ;;  %v693_v60 = vpop.f32.mrb[33].mxu1 }
 0x2b8   : > { %v2056_v62 = vadd.f32 %v693_v60, %v1954_v53  ;;  %744 = vmax.xlane.f32.xlu1 %v743_v56  ;;  %v695_v63 = vpop.f32.mrb[34].mxu1 }
 0x2b9   : > { %v2059_v2 = vadd.f32 %v695_v63, %v1951_v52  ;;  %v697_v4 = vpop.f32.mrb[35].mxu1 }
 0x2ba   : > { %v2062_v6 = vadd.f32 %v697_v4, %v1954_v53  ;;  %v746_v8 = vmax.f32 %v2053_v58, %v2056_v62 }
 0x2bc   : > { %747 = vmax.xlane.f32.xlu1 %v746_v8  ;;  %v749_v10 = vmax.f32 %v2059_v2, %v2062_v6 }
 0x2be   : > { %v701_v11 = vpop.f32.mrb[36].mxu1  ;;  %750 = vmax.xlane.f32.xlu0 %v749_v10 }
 0x2bf   : > { %v2069_v12 = vadd.f32 %v701_v11, %v1951_v52  ;;  %v703_v14 = vpop.f32.mrb[37].mxu1 }
 0x2c0   : > { %v2072_v16 = vadd.f32 %v703_v14, %v1954_v53  ;;  %v705_v18 = vpop.f32.mrb[38].mxu1 }
 0x2c1   : > { %v2075_v20 = vadd.f32 %v705_v18, %v1951_v52  ;;  %v707_v21 = vpop.f32.mrb[39].mxu1  ;;  %v2087_v52 = vpop.f32.mrb[14].mxu0 }
 0x2c2   : > { %v2078_v22 = vadd.f32 %v707_v21, %v1954_v53  ;;  %v752_v24 = vmax.f32 %v2069_v12, %v2072_v16  ;;  %v923_v53 = vpack.c.bf16 %v2087_v52, %v2085_v30  ;;  %v920_v32 = vpop.f32.mrb[15].mxu0 }
 0x2c3   : > { %v924_v34 = vpack.c.bf16 %v920_v32, %v916_v31 }
 0x2c4   : > { %753 = vmax.xlane.f32.xlu1 %v752_v24  ;;  %v755_v26 = vmax.f32 %v2075_v20, %v2078_v22 }
 0x2c5   : > { %957 = vmatprep.mubr.bf16.mxu1 %v924_v34 }
 0x2c6   : > { %756 = vmax.xlane.f32.xlu0 %v755_v26 }
 0x2d5   : > { %1017 = vperm.xlu1 %1346, %v1013_v38  }
 0x2dc   : > { %1022 = vperm.xlu0 %1347, %v1014_v36  }
 0x319   : > { %v712_v40 = vpop.xlane.xlu0 %711 }
 0x31a   : > { %v758_v41 = vsub.f32 %v1957_v55, %v712_v40  ;;  %v759_v42 = vsub.f32 %v1960_v57, %v712_v40 }
 0x31b   : > { %v715_v44 = vpop.xlane.xlu1 %714 }
 0x31c   : > { %v790_v46 = vmul.f32 1.442695, %v758_v41  ;;  %v792_v48 = vmul.f32 1.442695, %v759_v42  ;;  %v760_v50 = vsub.f32 %v1963_v59, %v715_v44  ;;  %v761_v54 = vsub.f32 %v1966_v61, %v715_v44 }
 0x31e   : > { %1350 = vpow2.f32 %v790_v46  ;;  %v794_v56 = vmul.f32 1.442695, %v760_v50  ;;  %v796_v60 = vmul.f32 1.442695, %v761_v54 }
 0x31f   : > { %1352 = vpow2.f32 %v792_v48 }
 0x320   : > { %1354 = vpow2.f32 %v794_v56 }
 0x321   : > { %1356 = vpow2.f32 %v796_v60  ;;  %v718_v63 = vpop.xlane.xlu1 %717 }
 0x322   : > { %v762_v4 = vsub.f32 %v1973_v3, %v718_v63  ;;  %v763_v55 = vsub.f32 %v1976_v5, %v718_v63 }
 0x324   : > { %v798_v8 = vmul.f32 1.442695, %v762_v4  ;;  %v800_v57 = vmul.f32 1.442695, %v763_v55 }
 0x325   : > { %v721_v10 = vpop.xlane.xlu1 %720 }
 0x326   : > { %v764_v11 = vsub.f32 %v1979_v7, %v721_v10  ;;  %v765_v59 = vsub.f32 %v1982_v9, %v721_v10  ;;  %1358 = vpow2.f32 %v798_v8 }
 0x327   : > { %1360 = vpow2.f32 %v800_v57 }
 0x328   : > { %v1351_v14 = vpop.eup %1350  ;;  %v802_v61 = vmul.f32 1.442695, %v764_v11  ;;  %v804_v18 = vmul.f32 1.442695, %v765_v59 }
 0x329   : > { %v1353_v21 = vpop.eup %1352  ;;  %v724_v24 = vpop.xlane.xlu1 %723 }
 0x32a   : > { %v1355_v26 = vpop.eup %1354  ;;  %1362 = vpow2.f32 %v802_v61  ;;  %v766_v3 = vsub.f32 %v1989_v13, %v724_v24  ;;  %v767_v5 = vsub.f32 %v1992_v15, %v724_v24 }
 0x32b   : > { %v1357_v31 = vpop.eup %1356  ;;  %1364 = vpow2.f32 %v804_v18  ;;  %v854_v32 = vpack.c.bf16 %v1355_v26, %v1351_v14 }
 0x32c   : > { %v806_v34 = vmul.f32 1.442695, %v766_v3  ;;  %v855_v7 = vpack.c.bf16 %v1357_v31, %v1353_v21  ;;  %v808_v36 = vmul.f32 1.442695, %v767_v5 }
 0x32d   : > { %v727_v9 = vpop.xlane.xlu1 %726 }
 0x32e   : > { %v768_v38 = vsub.f32 %v1995_v17, %v727_v9  ;;  %v769_v40 = vsub.f32 %v1998_v19, %v727_v9  ;;  %925 = vmatprep.subr.bf16.mxu1 %v855_v7  ;;  %966 = vmatprep.subr.bf16.mxu0 %v855_v7  ;;  %1366 = vpow2.f32 %v806_v34 }
 0x32f   : > { %926 = vmatpush1.bf16.xpose.msra.mxu1 %v854_v32  ;;  %967 = vmatpush1.bf16.xpose.msra.mxu0 %v854_v32  ;;  %1368 = vpow2.f32 %v808_v36 }
 0x330   : > { %v810_v41 = vmul.f32 1.442695, %v768_v38  ;;  %v812_v13 = vmul.f32 1.442695, %v769_v40  ;;  %v1359_v42 = vpop.eup %1358 }
 0x331   : > { %v730_v15 = vpop.xlane.xlu1 %729  ;;  %v1361_v48 = vpop.eup %1360 }
 0x332   : > { %1370 = vpow2.f32 %v810_v41  ;;  %v770_v44 = vsub.f32 %v2005_v23, %v730_v15  ;;  %v771_v46 = vsub.f32 %v2008_v25, %v730_v15 }
 0x333   : > { %1372 = vpow2.f32 %v812_v13 }
 0x334   : > { %v1363_v17 = vpop.eup %1362  ;;  %v814_v50 = vmul.f32 1.442695, %v770_v44  ;;  %v816_v54 = vmul.f32 1.442695, %v771_v46 }
 0x335   : > { %v1365_v19 = vpop.eup %1364  ;;  %v733_v56 = vpop.xlane.xlu1 %732  ;;  %v856_v60 = vpack.c.bf16 %v1363_v17, %v1359_v42 }
 0x336   : > { %v772_v63 = vsub.f32 %v2011_v27, %v733_v56  ;;  %v773_v4 = vsub.f32 %v2014_v29, %v733_v56  ;;  %v857_v55 = vpack.c.bf16 %v1365_v19, %v1361_v48  ;;  %1374 = vpow2.f32 %v814_v50 }
 0x337   : > { %1376 = vpow2.f32 %v816_v54 }
 0x338   : > { %v818_v8 = vmul.f32 1.442695, %v772_v63  ;;  %v820_v57 = vmul.f32 1.442695, %v773_v4  ;;  %927 = vmatprep.subr.bf16.mxu1 %v857_v55  ;;  %968 = vmatprep.subr.bf16.mxu0 %v857_v55  ;;  %v1367_v25 = vpop.eup %1366 }
 0x339   : > { %928 = vmatpush1.bf16.xpose.msra.mxu1 %v856_v60  ;;  %969 = vmatpush1.bf16.xpose.msra.mxu0 %v856_v60  ;;  %v736_v23 = vpop.xlane.xlu1 %735  ;;  %v1369_v59 = vpop.eup %1368 }
 0x33a   : > { %1378 = vpow2.f32 %v818_v8  ;;  %v774_v10 = vsub.f32 %v2021_v33, %v736_v23  ;;  %v775_v11 = vsub.f32 %v2024_v35, %v736_v23 }
 0x33b   : > { %1380 = vpow2.f32 %v820_v57 }
 0x33c   : > { %v1371_v27 = vpop.eup %1370  ;;  %v822_v29 = vmul.f32 1.442695, %v774_v10  ;;  %v824_v61 = vmul.f32 1.442695, %v775_v11 }
 0x33d   : > { %v1373_v14 = vpop.eup %1372  ;;  %v739_v18 = vpop.xlane.xlu1 %738  ;;  %v858_v21 = vpack.c.bf16 %v1371_v27, %v1367_v25 }
 0x33e   : > { %v776_v24 = vsub.f32 %v2027_v37, %v739_v18  ;;  %v777_v26 = vsub.f32 %v2030_v39, %v739_v18  ;;  %v859_v3 = vpack.c.bf16 %v1373_v14, %v1369_v59  ;;  %1382 = vpow2.f32 %v822_v29 }
 0x33f   : > { %1384 = vpow2.f32 %v824_v61 }
 0x340   : > { %v826_v5 = vmul.f32 1.442695, %v776_v24  ;;  %v828_v31 = vmul.f32 1.442695, %v777_v26  ;;  %929 = vmatprep.subr.bf16.mxu1 %v859_v3  ;;  %970 = vmatprep.subr.bf16.mxu0 %v859_v3  ;;  %v1375_v35 = vpop.eup %1374 }
 0x341   : > { %930 = vmatpush1.bf16.xpose.msra.mxu1 %v858_v21  ;;  %971 = vmatpush1.bf16.xpose.msra.mxu0 %v858_v21  ;;  %v742_v33 = vpop.xlane.xlu1 %741  ;;  %v1377_v7 = vpop.eup %1376 }
 0x342   : > { %1386 = vpow2.f32 %v826_v5  ;;  %v778_v32 = vsub.f32 %v2037_v43, %v742_v33  ;;  %v779_v34 = vsub.f32 %v2040_v45, %v742_v33 }
 0x343   : > { %1388 = vpow2.f32 %v828_v31 }
 0x344   : > { %v1379_v37 = vpop.eup %1378  ;;  %v830_v39 = vmul.f32 1.442695, %v778_v32  ;;  %v832_v9 = vmul.f32 1.442695, %v779_v34 }
 0x345   : > { %v1381_v36 = vpop.eup %1380  ;;  %v745_v38 = vpop.xlane.xlu1 %744  ;;  %v860_v40 = vpack.c.bf16 %v1379_v37, %v1375_v35 }
 0x346   : > { %v780_v41 = vsub.f32 %v2043_v47, %v745_v38  ;;  %v781_v13 = vsub.f32 %v2046_v49, %v745_v38  ;;  %v861_v15 = vpack.c.bf16 %v1381_v36, %v1377_v7  ;;  %1390 = vpow2.f32 %v830_v39 }
 0x347   : > { %1392 = vpow2.f32 %v832_v9 }
 0x348   : > { %v834_v42 = vmul.f32 1.442695, %v780_v41  ;;  %v836_v44 = vmul.f32 1.442695, %v781_v13  ;;  %931 = vmatprep.subr.bf16.mxu1 %v861_v15  ;;  %972 = vmatprep.subr.bf16.mxu0 %v861_v15  ;;  %v1383_v45 = vpop.eup %1382 }
 0x349   : > { %932 = vmatpush1.bf16.xpose.msra.mxu1 %v860_v40  ;;  %973 = vmatpush1.bf16.xpose.msra.mxu0 %v860_v40  ;;  %v748_v43 = vpop.xlane.xlu1 %747  ;;  %v1385_v48 = vpop.eup %1384 }
 0x34a   : > { %1394 = vpow2.f32 %v834_v42  ;;  %v783_v46 = vsub.f32 %v2056_v62, %v748_v43  ;;  %v782_v47 = vsub.f32 %v2053_v58, %v748_v43 }
 0x34b   : > { %1396 = vpow2.f32 %v836_v44  ;;  %v751_v17 = vpop.xlane.xlu0 %750 }
 0x34c   : > { %v1387_v49 = vpop.eup %1386  ;;  %v840_v50 = vmul.f32 1.442695, %v783_v46  ;;  %v784_v19 = vsub.f32 %v2059_v2, %v751_v17  ;;  %v785_v54 = vsub.f32 %v2062_v6, %v751_v17  ;;  %v838_v8 = vmul.f32 1.442695, %v782_v47 }
 0x34d   : > { %v1389_v56 = vpop.eup %1388  ;;  %v862_v60 = vpack.c.bf16 %v1387_v49, %v1383_v45 }
 0x34e   : > { %v842_v63 = vmul.f32 1.442695, %v784_v19  ;;  %v844_v4 = vmul.f32 1.442695, %v785_v54  ;;  %v863_v55 = vpack.c.bf16 %v1389_v56, %v1385_v48  ;;  %1398 = vpow2.f32 %v840_v50 }
 0x350   : > { %933 = vmatprep.subr.bf16.mxu1 %v863_v55  ;;  %974 = vmatprep.subr.bf16.mxu0 %v863_v55  ;;  %1400 = vpow2.f32 %v844_v4  ;;  %v1391_v62 = vpop.eup %1390 }
 0x351   : > { %934 = vmatpush1.bf16.xpose.msra.mxu1 %v862_v60  ;;  %975 = vmatpush1.bf16.xpose.msra.mxu0 %v862_v60  ;;  %v754_v58 = vpop.xlane.xlu1 %753  ;;  %1402 = vpow2.f32 %v842_v63  ;;  %v1393_v2 = vpop.eup %1392 }
 0x352   : > { %v787_v57 = vsub.f32 %v2072_v16, %v754_v58  ;;  %1404 = vpow2.f32 %v838_v8  ;;  %v786_v25 = vsub.f32 %v2069_v12, %v754_v58 }
 0x353   : > { %v757_v6 = vpop.xlane.xlu0 %756 }
 0x354   : > { %v1395_v23 = vpop.eup %1394  ;;  %v848_v10 = vmul.f32 1.442695, %v787_v57  ;;  %v788_v11 = vsub.f32 %v2075_v20, %v757_v6  ;;  %v789_v59 = vsub.f32 %v2078_v22, %v757_v6  ;;  %v846_v21 = vmul.f32 1.442695, %v786_v25 }
 0x355   : > { %v1397_v27 = vpop.eup %1396  ;;  %v864_v29 = vpack.c.bf16 %v1395_v23, %v1391_v62  ;;  %v1018_v15 = vpop.permute.xlu1 %1017 }
 0x356   : > { %v850_v14 = vmul.f32 1.442695, %v788_v11  ;;  %v852_v61 = vmul.f32 1.442695, %v789_v59  ;;  %v865_v18 = vpack.c.bf16 %v1397_v27, %v1393_v2  ;;  %1406 = vpow2.f32 %v848_v10 }
 0x358   : > { %935 = vmatprep.subr.bf16.mxu1 %v865_v18  ;;  %976 = vmatprep.subr.bf16.mxu0 %v865_v18  ;;  %1408 = vpow2.f32 %v852_v61  ;;  %v1399_v16 = vpop.eup %1398 }
 0x359   : > { %936 = vmatpush1.bf16.xpose.msra.mxu1 %v864_v29  ;;  %977 = vmatpush1.bf16.xpose.msra.mxu0 %v864_v29  ;;  %1410 = vpow2.f32 %v850_v14 }
 0x35a   : > { %v1401_v12 = vpop.eup %1400  ;;  %1412 = vpow2.f32 %v846_v21 }
 0x35b   : > { %v1403_v24 = vpop.eup %1402  ;;  %v867_v20 = vpack.c.bf16 %v1401_v12, %v1399_v16  ;;  %v1023_v13 = vpop.permute.xlu0 %1022 }
 0x35c   : > { %v1405_v26 = vpop.eup %1404 }
 0x35d   : > { %937 = vmatprep.subr.bf16.mxu1 %v867_v20  ;;  %978 = vmatprep.subr.bf16.mxu0 %v867_v20  ;;  %v866_v22 = vpack.c.bf16 %v1403_v24, %v1405_v26 }
 0x360   : > { %v1407_v3 = vpop.eup %1406 }
 0x361   : > { %938 = vmatpush1.bf16.xpose.msra.mxu1 %v866_v22  ;;  %979 = vmatpush1.bf16.xpose.msra.mxu0 %v866_v22 }
 0x362   : > { %v1409_v5 = vpop.eup %1408 }
 0x363   : > { %v1411_v31 = vpop.eup %1410  ;;  %v869_v33 = vpack.c.bf16 %v1409_v5, %v1407_v3 }
 0x364   : > { %v1413_v35 = vpop.eup %1412 }
 0x365   : > { %939 = vmatprep.subr.bf16.mxu1 %v869_v33  ;;  %980 = vmatprep.subr.bf16.mxu0 %v869_v33  ;;  %v868_v32 = vpack.c.bf16 %v1411_v31, %v1413_v35 }
 0x369   : > { %940 = vmatpush1.bf16.xpose.msra.mxu1 %v868_v32  ;;  %981 = vmatpush1.bf16.xpose.msra.mxu0 %v868_v32 }
 0x370   : > { %999 = vmatmul.mubr.bf16.vlgmr.msra.gmra.mrb[16].mxu0 %v1611_v28  ;;  %958 = vmatmul.mubr.bf16.vlgmr.msra.gmra.mrb[40].mxu1 %v923_v53  ;;  %v1028_v53 = vstv %s1027_s26  ;;  %s1612_s26 = smov [#allocation8]  }
 0x371   : > { %s1480_s23 = sshll.u32 %s1612_s26, 4  ;;  %s1481_s23 = int_to_ptr.vmem [resolvable:$false] %s1480_s23 }
 0x372   : > { %s1482_s18 = scalar_lea.vmem %s1481_s23, 512  ;;  %p1483_p4 = scmp.lt.s32.totalorder %s2138_s13, %s1481_s23 }
 0x373   : > { %p1484_p3 = scmp.lt.s32.totalorder %s1482_s18, %s1476_s25 }
 0x375   : > { %p1485_p2 = por %p1484_p3, %p1483_p4 }
 0x377   : > { %p1486_p9 = pnand %p1485_p2, %p1479_p12 }
 0x443   : > { %v1000_v34 = vpop.f32.mrb[16].mxu0  ;;  %v959_v7 = vpop.f32.mrb[40].mxu1 }
 0x444   : > { %1414 = vrcp.f32 %v1000_v34  ;;  %v1002_v37 = vpop.f32.mrb[17].mxu0  ;;  %v961_v39 = vpop.f32.mrb[41].mxu1 }
 0x445   : > { %v1003_v36 = vpop.f32.mrb[18].mxu0  ;;  %v962_v9 = vpop.f32.mrb[42].mxu1 }
 0x446   : > { %v1004_v38 = vpop.f32.mrb[19].mxu0  ;;  %v964_v40 = vpop.f32.mrb[43].mxu1 }
 0x44e   : > { %v1415_v41 = vpop.eup %1414 }
 0x44f   : > { %v1010_v28 = vrot.slane %v1415_v41, %v1948_v51 }
 0x451   : > { %v1011_v30 = vmul.f32 %v1010_v28, %v959_v7  ;;  %v1012_v52 = vmul.f32 %v1010_v28, %v962_v9 }
 0x453   : > { %v1026_v42 = vadd.f32 %v1023_v13, %v1012_v52  ;;  %v1025_v44 = vadd.f32 %v1018_v15, %v1011_v30 }
 0x455   : > { %v1030_v43 = vmul.f32 %v1028_v53, %v1026_v42  ;;  %v1029_v51 = vmul.f32 %v1028_v53, %v1025_v44 }
 0x457   : > { %v1032_v45 = vadd.f32 %v1030_v43, %v1905_v1  ;;  %v1031_v46 = vadd.f32 %v1029_v51, %v1903_v0 }
 0x459   : > { %1034 = vst [vmem:[%s354_s21 + $0x8] sm:$0xff] %v1032_v45  ;;  %1033 = vst [vmem:[%s354_s21] sm:$0xff] %v1031_v46 }
 0x45a   : > { %1489 = shalt.err (!%p1486_p9)
}
 0x45b   : > { %s1490_s21 = scalar_lea.hbm %s2143_s9, 256  ;;  %s1494_s16 = scalar_lea.hbm %s2256_s15, 1024 }
 0x45c   : > { %p1491_p0 = scmp.ne.s32.totalorder %s2143_s9, %s1490_s21  ;;  %p1495_p6 = scmp.lt.u32.totalorder %s2143_s9, %s2256_s15 }
 0x45d   : > { %p1496_p8 = scmp.lt.u32.totalorder %s1494_s16, %s1490_s21  ;;  %p1498_p7 = scmp.lt.u32.totalorder %s1490_s21, %s2143_s9 }
 0x45e   : > { %p1492_p1 = pnand %p1491_p0, %p2257_p11 }
 0x45f   : > { %p1497_p10 = por %p1496_p8, %p1495_p6 }
 0x460   : > { %p1493_p13 = pneg %p1492_p1 }
 0x461   : > { %p1499_p5 = por %p1498_p7, %p1497_p10 }
 0x463   : > { %p1500_p12 = pnand %p1499_p5, %p1493_p13 }
 0x465   : > { %1503 = shalt.err (!%p1500_p12)
}
 0x466   : > { %s1613_s25 = smov 128   ;;  %s1614_s23 = smov 256  }
 0x467   : > { %s1615_s18 = smov 8  }
 0x468   : > { %1234 = dma.vmem_to_hbm [thread:$0]  (%p2257_p11), %s2138_s13, 256, %s2143_s9, %s1036_s7, %s1613_s25, %s1614_s23, %s1615_s18  }
 0x469 PF: > { %s2258_s22 = sld [smem:[#allocation17_spill]]  ;;  %p1248_p4 = scmp.ge.s32.totalorder %s1602_s12, 2 }
 0x46a   : > { %s1065_s19 = sand.u32 1, %s1574_s29  }
 0x46b   : > { %s1066_s21 = scalar_lea.sflag [#allocation5], %s1065_s19 }
 0x46f   : > { %p2259_p3 = scmp.ne.s32.totalorder %s2258_s22, 0 }
 0x471   : > { %p1244_p2 = pnand %p1248_p4, %p2259_p3 }
 0x473   : > { %1557 = dma.done.wait (!%p1244_p2), %s1066_s21, 256  }
 0x474   : > { %1559 = vsyncadd (!%p1244_p2), %s1066_s21, 4294967040  ;;  %s27_s12 = sadd.s32 1, %s1602_s12   ;;  %s2260_s24 = sld [smem:[#allocation14_spill]] }
 0x475   : > { %p24_p9 = scmp.ge.s32.totalorder %s27_s12, 6   ;;  %s2261_s17 = sld [smem:[#allocation15_spill]] }
 0x476   : > { %s2262_s26 = smov %s1566_s27  ;;  %s2263_s27 = smov %s1570_s28 }
 0x477   : > { %s2264_s28 = smov %s1821_s20  ;;  %s2265_s29 = smov %s1578_s30 }
 0x478   : > { %s2266_s30 = smov %s1582_s8  ;;  %s2267_s8 = smov %s1760_s14 }
 0x479   : > { %s2268_s9 = smov %s1594_s10  ;;  %s2269_s6 = smov %s1598_s11 }
 0x47a   : > { %s2270_s10 = smov %s2260_s24  ;;  %26 = sbr.rel (!%p24_p9) target bundleno = 14 (0xe), region = 106 }
 0x47b   : > { %s2271_s11 = smov %s2261_s17 }
 0x481   :  { %1071 = vsyncpa [#allocation4], 1 }
 0x482   :  { %1073 = vsyncpa [#allocation4 + $0x1], 1 }
 0x483   :  { %1074 = vsyncpa [#allocation7], 1 }
 0x484   :  { %1076 = vsyncpa [#allocation7 + $0x1], 1 }
 0x485   :  { %1077 = vsyncpa [#allocation5], 1 }
 0x486   :  { %1079 = vsyncpa [#allocation5 + $0x1], 1 }

</bundles_post_ra>
